<compile_context>
chip_gen: v6e
topology: v6e:2x2x1
jax: 0.10.0
libtpu: 0.0.40
codegen_flags: <defaults>
</compile_context>

<pallas_src>
import jax
import jax.numpy as jnp
from jax.experimental import pallas as pl
from jax.experimental.pallas import tpu as pltpu

_EPS = 1e-12


def _is_multi_tc_chip():
    """True on chips with >1 TensorCore per chip (v7x-style)."""
    try:
        kind = jax.devices()[0].device_kind.lower()
    except Exception:
        return False
    return ("v7" in kind) or ("tpu7" in kind)


def _tile_plan(rows, dtype, max_tile_rows, want_multi_tiles):
    """Tile rows for a (rows, 128) slab. Returns (tile_r, num_tiles, ragged)."""
    pack = {4: 8, 2: 16, 1: 32}.get(jnp.dtype(dtype).itemsize, 8)
    max_r = max(pack, (int(max_tile_rows) // pack) * pack)
    if rows <= max_r:
        tile_r = rows                                  # single full-extent block
        if want_multi_tiles and rows >= 2 * pack:
            # Multi-TC chip: keep >= 2 parallel tiles so both cores get work.
            half = -(-rows // 2)
            tile_r = -(-half // pack) * pack           # round_up(cdiv(rows,2), pack)
    else:
        tile_r = max_r
    num_tiles = -(-rows // tile_r)
    ragged = (num_tiles * tile_r) != rows
    return tile_r, num_tiles, ragged


def _pad_to_slab(x):
    """Flatten + zero-pad a TINY tensor (y_e) to (r, 128) in native dtype."""
    flat = x.reshape(-1)
    n = int(flat.shape[0])
    r = max(1, -(-n // 128))
    pad = r * 128 - n
    if pad:
        flat = jnp.pad(flat, (0, pad))
    return flat.reshape(r, 128)


def _make_loss_kernel(*, lam_t, lam_e, lam_a, app_thresh, has_app,
                      tile_r, rows, ragged, accumulate):
    """Fused loss kernel. Lambdas / shapes are baked in as constants."""

    def small_terms(area_ref, ye_ref, ya_ref):
        # Tightness + binary entropy (+ appearance hinge); computed once.
        x = ye_ref[...].astype(jnp.float32)
        logx = jnp.log(jnp.maximum(x, _EPS))
        log1mx = jnp.log(jnp.maximum(1.0 - x, _EPS))
        entr = -jnp.sum(x * logx + (1.0 - x) * log1mx)
        extra = lam_t * area_ref[0] + lam_e * entr
        if has_app:
            row_sums = jnp.sum(ya_ref[...].astype(jnp.float32),
                               axis=-1, keepdims=True)          # (B*T*O, 1)
            extra = extra + lam_a * jnp.sum(jnp.maximum(app_thresh - row_sums, 0.0))
        return extra

    def kernel(area_ref, out_ref, tgt_ref, ye_ref, *rest):
        if has_app:
            ya_ref, res_ref = rest
        else:
            ya_ref, res_ref = None, rest[0]

        # --- reconstruction partial: per-lane column sums of (out - tgt)^2.
        diff = out_ref[...].astype(jnp.float32) - tgt_ref[...].astype(jnp.float32)
        if ragged:
            # Ragged last tile: zero the diff for rows past the array end
            # BEFORE squaring (garbage/NaN in the pad region is discarded).
            row = jax.lax.broadcasted_iota(jnp.int32, diff.shape, 0)
            valid = (pl.program_id(0) * tile_r + row) < rows
            diff = jnp.where(valid, diff, 0.0)
        vec = jnp.sum(diff * diff, axis=0, keepdims=True)        # (1, 128)

        lane = jax.lax.broadcasted_iota(jnp.int32, res_ref.shape,
                                        len(res_ref.shape) - 1)

        if accumulate:
            # Single-TC chips: resident (1,128) accumulator, "arbitrary" axis.
            @pl.when(pl.program_id(0) == 0)
            def _():
                res_ref[...] = jnp.where(
                    lane == 0, small_terms(area_ref, ye_ref, ya_ref), 0.0)
            res_ref[...] = res_ref[...] + vec.reshape(res_ref.shape)
        else:
            # Multi-TC chips: one lane-dense partial block per tile, "parallel".
            res_ref[...] = vec.reshape(res_ref.shape)

            @pl.when(pl.program_id(0) == 0)
            def _():
                res_ref[...] = res_ref[...] + jnp.where(
                    lane == 0, small_terms(area_ref, ye_ref, ya_ref), 0.0)

    return kernel


def loss_calculator_forward(output, target, area, y_e, Y_a=None, *,
                            task="mot", T=4, O=3, D=2, h=4, w=4,
                            max_tile_rows=None, parallel_partials=None):
    """JAX/Pallas equivalent of LossCalculator.forward (returns the scalar loss)."""
    lam_t = 0.1 if task == "duke" else 13.0
    lam_e, lam_a, app_thresh = 1.0, 0.1, 20.0
    has_app = Y_a is not None

    if parallel_partials is None:
        parallel_partials = _is_multi_tc_chip()
    if max_tile_rows is None:
        max_tile_rows = 4096 if parallel_partials else 2048

    n_recon = int(output.size)
    n_full = (n_recon // 128) * 128
    rows = n_full // 128
    tail = n_recon - n_full

    out_flat = output.reshape(-1)
    tgt_flat = target.reshape(-1)

    # Tiny non-multiple-of-128 tail (< 128 elems): plain-JAX contribution
    # instead of padding (and copying) the whole flat tensor through HBM.
    tail_loss = jnp.float32(0.0)
    if tail:
        ot = jax.lax.slice_in_dim(out_flat, n_full, n_recon).astype(jnp.float32)
        tt = jax.lax.slice_in_dim(tgt_flat, n_full, n_recon).astype(jnp.float32)
        tail_loss = jnp.sum((ot - tt) ** 2)

    if rows == 0:
        # Everything is tiny -> no kernel-sized work; plain JAX is the right tool.
        return _reference_loss(output, target, area, y_e, Y_a,
                               task=task, T=T, O=O, D=D, h=h, w=w)

    tile_r, num_tiles, ragged = _tile_plan(rows, output.dtype, max_tile_rows,
                                           parallel_partials)

    # Zero-copy lane-dense views (reshape of a contiguous array is free); only
    # the rare tail case needs a prefix slice.
    if tail:
        out2 = jax.lax.slice_in_dim(out_flat, 0, n_full).reshape(rows, 128)
        tgt2 = jax.lax.slice_in_dim(tgt_flat, 0, n_full).reshape(rows, 128)
    else:
        out2 = out_flat.reshape(rows, 128)
        tgt2 = tgt_flat.reshape(rows, 128)

    # y_e slab: tiny, zero-padded (pads contribute exactly 0 entropy).
    ye2 = _pad_to_slab(y_e)
    area_arr = jnp.asarray(area, jnp.float32).reshape(1)

    operands = [area_arr, out2, tgt2, ye2]
    in_specs = [
        pl.BlockSpec((1,), lambda i: (0,),
                     memory_space=pltpu.MemorySpace.SMEM),        # area scalar
        pl.BlockSpec((tile_r, 128), lambda i: (i, 0)),            # output tile
        pl.BlockSpec((tile_r, 128), lambda i: (i, 0)),            # target tile
        pl.BlockSpec(ye2.shape, lambda i: (0, 0)),                # y_e (resident)
    ]
    if has_app:
        # Y_a.view(-1, T, O, D*h*w).sum(3): rows of length D*h*w (no padding,
        # padded rows would add spurious hinge terms).
        ya2 = Y_a.reshape(-1, D * h * w)
        operands.append(ya2)
        in_specs.append(pl.BlockSpec(ya2.shape, lambda i: (0, 0)))  # Y_a (resident)
        # TODO(synk): if Y_a can be large in production, stream it on its own
        # grid axis (or fold its hinge term into the wrapper) instead of
        # keeping it resident -- relevant for v7x's 64 MiB VMEM.

    kernel = _make_loss_kernel(lam_t=lam_t, lam_e=lam_e, lam_a=lam_a,
                               app_thresh=app_thresh, has_app=has_app,
                               tile_r=tile_r, rows=rows, ragged=ragged,
                               accumulate=not parallel_partials)

    if parallel_partials:
        out_shape = jax.ShapeDtypeStruct((num_tiles, 1, 128), jnp.float32)
        out_specs = pl.BlockSpec((1, 1, 128), lambda i: (i, 0, 0))
        semantics = ("parallel",)
        out_bytes = num_tiles * 128 * 4
    else:
        out_shape = jax.ShapeDtypeStruct((1, 128), jnp.float32)
        out_specs = pl.BlockSpec((1, 128), lambda i: (0, 0))
        semantics = ("arbitrary",)
        out_bytes = 128 * 4

    # Advisory cost estimate: mem-bound elementwise reduction + a few logs.
    bytes_accessed = sum(int(op.size) * op.dtype.itemsize for op in operands)
    bytes_accessed += out_bytes
    flops = 3 * n_full + 7 * int(y_e.size)
    if has_app:
        flops += int(Y_a.size) + 3 * int(Y_a.size // (D * h * w))
    cost = pl.CostEstimate(flops=int(flops),
                           transcendentals=int(2 * y_e.size),
                           bytes_accessed=int(bytes_accessed))

    partials = pl.pallas_call(
        kernel,
        out_shape=out_shape,
        grid=(num_tiles,),
        in_specs=in_specs,
        out_specs=out_specs,
        compiler_params=pltpu.CompilerParams(
            dimension_semantics=semantics,
            vmem_limit_bytes=32 * 1024 * 1024),
        cost_estimate=cost,
    )(*operands)

    return jnp.sum(partials) + tail_loss


def _reference_loss(output, target, area, y_e, Y_a, *, task, T, O, D, h, w):
    """Pure-JAX reference mirroring the PyTorch forward."""
    lam_t = 0.1 if task == "duke" else 13.0
    recon = jnp.sum((output.astype(jnp.float32) - target.astype(jnp.float32)) ** 2)
    x = y_e.astype(jnp.float32)
    entr = -jnp.sum(x * jnp.log(jnp.maximum(x, _EPS))
                    + (1.0 - x) * jnp.log(jnp.maximum(1.0 - x, _EPS)))
    loss = recon + lam_t * area + 1.0 * entr
    if Y_a is not None:
        sums = Y_a.astype(jnp.float32).reshape(-1, T, O, D * h * w).sum(3)
        loss = loss + 0.1 * jnp.sum(jnp.maximum(20.0 - sums, 0.0))
    return loss


if __name__ == "__main__":
    key = jax.random.PRNGKey(0)
    k1, k2, k3, k4, k5, k6, k7, k8, k9 = jax.random.split(key, 9)

    B, T, O, D, h, w = 2, 4, 3, 2, 4, 4
    output = jax.random.normal(k1, (B, 4, 16, 16), dtype=jnp.float32)   # reconstruction
    target = jax.random.normal(k2, (B, 4, 16, 16), dtype=jnp.float32)
    area = jax.random.uniform(k3, (), dtype=jnp.float32) * 5.0          # scalar "area"
    y_e = jax.random.uniform(k4, (B, T, O), dtype=jnp.float32,
                             minval=0.01, maxval=0.99)                  # existence probs
    Y_a = jax.random.uniform(k5, (B, T, O, D, h, w), dtype=jnp.float32) # appearance maps

    kw = dict(task="mot", T=T, O=O, D=D, h=h, w=w)
    ref = jax.block_until_ready(_reference_loss(output, target, area, y_e, Y_a, **kw))

    def check(val, expected, name):
        val = jax.block_until_ready(val)
        assert jnp.allclose(val, expected, rtol=1e-5, atol=1e-3), (name, val, expected)

    # 1) auto path (chip-dependent default)
    check(loss_calculator_forward(output, target, area, y_e, Y_a, **kw), ref, "auto")

    # 2) single-TC accumulator path ("arbitrary" axis, resident (1,128) output)
    check(loss_calculator_forward(output, target, area, y_e, Y_a,
                                  parallel_partials=False, **kw), ref, "accum")

    # 3) multi-TC parallel-partials path (>= 2 tiles, "parallel" axis)
    check(loss_calculator_forward(output, target, area, y_e, Y_a,
                                  parallel_partials=True, **kw), ref, "parallel")

    # 4) multi-tile ragged last block (rows=20, tile_r=8 -> in-kernel row mask)
    out_r = jax.random.normal(k6, (B, 5, 16, 16), dtype=jnp.float32)
    tgt_r = jax.random.normal(k7, (B, 5, 16, 16), dtype=jnp.float32)
    ref_r = jax.block_until_ready(_reference_loss(out_r, tgt_r, area, y_e, Y_a, **kw))
    check(loss_calculator_forward(out_r, tgt_r, area, y_e, Y_a,
                                  max_tile_rows=8, parallel_partials=False, **kw),
          ref_r, "ragged-accum")
    check(loss_calculator_forward(out_r, tgt_r, area, y_e, Y_a,
                                  max_tile_rows=8, parallel_partials=True, **kw),
          ref_r, "ragged-parallel")

    # 5) non-multiple-of-128 element count (plain-JAX tail fragment path)
    out_t = jax.random.normal(k8, (2, 3, 7, 5), dtype=jnp.float32)      # 210 elems
    tgt_t = jax.random.normal(k9, (2, 3, 7, 5), dtype=jnp.float32)
    ref_t = jax.block_until_ready(_reference_loss(out_t, tgt_t, area, y_e, Y_a, **kw))
    check(loss_calculator_forward(out_t, tgt_t, area, y_e, Y_a,
                                  parallel_partials=False, **kw), ref_t, "tail")

    # 6) no-appearance path (kwargs without Y_a)
    ref_na = jax.block_until_ready(_reference_loss(output, target, area, y_e, None, **kw))
    check(loss_calculator_forward(output, target, area, y_e, None,
                                  parallel_partials=False, **kw), ref_na, "no-app")

    # 7) bf16 reconstruction inputs (cast to f32 in-kernel, 16-row packing)
    out_b = output.astype(jnp.bfloat16)
    tgt_b = target.astype(jnp.bfloat16)
    ref_b = jax.block_until_ready(_reference_loss(out_b, tgt_b, area, y_e, Y_a, **kw))
    check(loss_calculator_forward(out_b, tgt_b, area, y_e, Y_a,
                                  parallel_partials=False, **kw), ref_b, "bf16")

    print("KERNEL_OK")
</pallas_src>

<mosaic_0001>
module attributes {stable_mosaic.version = 11 : i64} {
  func.func @kernel(%arg0: i32, %arg1: memref<1xf32, #tpu.memory_space<smem>>, %arg2: memref<16x128xf32, #tpu.memory_space<vmem>>, %arg3: memref<16x128xf32, #tpu.memory_space<vmem>>, %arg4: memref<1x128xf32, #tpu.memory_space<vmem>>, %arg5: memref<24x32xf32, #tpu.memory_space<vmem>>, %arg6: memref<1x128xf32, #tpu.memory_space<vmem>>) attributes {dimension_semantics = [#tpu.dimension_semantics<arbitrary>], iteration_bounds = array<i64: 1>, scalar_prefetch = 0 : i64, scratch_operands = 0 : i64, tpu.core_type = #tpu.core_type<tc>, window_params = [{transform_indices = @transform_0, window_bounds = array<i64: 1>}, {transform_indices = @transform_1, window_bounds = array<i64: 16, 128>}, {transform_indices = @transform_2, window_bounds = array<i64: 16, 128>}, {pipeline_mode = #tpu.pipeline_mode<synchronous>, transform_indices = @transform_3, window_bounds = array<i64: 1, 128>}, {pipeline_mode = #tpu.pipeline_mode<synchronous>, transform_indices = @transform_4, window_bounds = array<i64: 24, 32>}, {pipeline_mode = #tpu.pipeline_mode<synchronous>, transform_indices = @transform_5, window_bounds = array<i64: 1, 128>}]} {
    %c0 = arith.constant 0 : index
    %c0_0 = arith.constant 0 : index
    %0 = vector.load %arg2[%c0, %c0_0] : memref<16x128xf32, #tpu.memory_space<vmem>>, vector<16x128xf32>
    %c0_1 = arith.constant 0 : index
    %c0_2 = arith.constant 0 : index
    %1 = vector.load %arg3[%c0_1, %c0_2] : memref<16x128xf32, #tpu.memory_space<vmem>>, vector<16x128xf32>
    %2 = arith.subf %0, %1 : vector<16x128xf32>
    %3 = arith.mulf %2, %2 : vector<16x128xf32>
    %cst = arith.constant dense<0.000000e+00> : vector<128xf32>
    %4 = vector.multi_reduction <add>, %3, %cst [0] : vector<16x128xf32> to vector<128xf32>
    %5 = vector.shape_cast %4 : vector<128xf32> to vector<1x128xf32>
    %6 = tpu.iota {dimensions = array<i32: 1>} : vector<1x128xi32>
    %c0_i32 = arith.constant 0 : i32
    %7 = arith.cmpi eq, %arg0, %c0_i32 : i32
    %8 = arith.extui %7 : i1 to i32
    %c0_i32_3 = arith.constant 0 : i32
    %9 = arith.cmpi ne, %8, %c0_i32_3 : i32
    scf.if %9 {
      %c0_i32_8 = arith.constant 0 : i32
      %13 = vector.broadcast %c0_i32_8 : i32 to vector<1x128xi32>
      %14 = arith.cmpi eq, %6, %13 : vector<1x128xi32>
      %c0_9 = arith.constant 0 : index
      %c0_10 = arith.constant 0 : index
      %15 = vector.load %arg4[%c0_9, %c0_10] : memref<1x128xf32, #tpu.memory_space<vmem>>, vector<1x128xf32>
      %cst_11 = arith.constant 9.99999996E-13 : f32
      %16 = vector.broadcast %cst_11 : f32 to vector<1x128xf32>
      %17 = arith.maximumf %15, %16 : vector<1x128xf32>
      %18 = math.log %17 : vector<1x128xf32>
      %cst_12 = arith.constant 1.000000e+00 : f32
      %19 = vector.broadcast %cst_12 : f32 to vector<1x128xf32>
      %20 = arith.subf %19, %15 : vector<1x128xf32>
      %cst_13 = arith.constant 9.99999996E-13 : f32
      %21 = vector.broadcast %cst_13 : f32 to vector<1x128xf32>
      %22 = arith.maximumf %20, %21 : vector<1x128xf32>
      %23 = math.log %22 : vector<1x128xf32>
      %24 = arith.mulf %15, %18 : vector<1x128xf32>
      %cst_14 = arith.constant 1.000000e+00 : f32
      %25 = vector.broadcast %cst_14 : f32 to vector<1x128xf32>
      %26 = arith.subf %25, %15 : vector<1x128xf32>
      %27 = arith.mulf %26, %23 : vector<1x128xf32>
      %28 = arith.addf %24, %27 : vector<1x128xf32>
      %29 = vector.shape_cast %28 : vector<1x128xf32> to vector<1x1x128xf32>
      %cst_15 = arith.constant dense<0.000000e+00> : vector<1xf32>
      %30 = vector.multi_reduction <add>, %29, %cst_15 [1, 2] : vector<1x1x128xf32> to vector<1xf32>
      %31 = vector.shape_cast %30 : vector<1xf32> to vector<1x1x1xf32>
      %32 = vector.extract %31[0, 0, 0] : f32 from vector<1x1x1xf32>
      %cst_16 = arith.constant 0.000000e+00 : f32
      %33 = arith.subf %cst_16, %32 : f32
      %c0_17 = arith.constant 0 : index
      %34 = memref.load %arg1[%c0_17] : memref<1xf32, #tpu.memory_space<smem>>
      %cst_18 = arith.constant 1.300000e+01 : f32
      %35 = arith.mulf %cst_18, %34 : f32
      %cst_19 = arith.constant 1.000000e+00 : f32
      %36 = arith.mulf %cst_19, %33 : f32
      %37 = arith.addf %35, %36 : f32
      %c0_20 = arith.constant 0 : index
      %c0_21 = arith.constant 0 : index
      %38 = vector.load %arg5[%c0_20, %c0_21] : memref<24x32xf32, #tpu.memory_space<vmem>>, vector<24x32xf32>
      %cst_22 = arith.constant dense<0.000000e+00> : vector<24xf32>
      %39 = vector.multi_reduction <add>, %38, %cst_22 [1] : vector<24x32xf32> to vector<24xf32>
      %40 = vector.shape_cast %39 : vector<24xf32> to vector<24x1xf32>
      %cst_23 = arith.constant 2.000000e+01 : f32
      %41 = vector.broadcast %cst_23 : f32 to vector<24x1xf32>
      %42 = arith.subf %41, %40 : vector<24x1xf32>
      %cst_24 = arith.constant 0.000000e+00 : f32
      %43 = vector.broadcast %cst_24 : f32 to vector<24x1xf32>
      %44 = arith.maximumf %42, %43 : vector<24x1xf32>
      %45 = vector.shape_cast %44 : vector<24x1xf32> to vector<1x24x1xf32>
      %cst_25 = arith.constant dense<0.000000e+00> : vector<1xf32>
      %46 = vector.multi_reduction <add>, %45, %cst_25 [1, 2] : vector<1x24x1xf32> to vector<1xf32>
      %47 = vector.shape_cast %46 : vector<1xf32> to vector<1x1x1xf32>
      %48 = vector.extract %47[0, 0, 0] : f32 from vector<1x1x1xf32>
      %cst_26 = arith.constant 1.000000e-01 : f32
      %49 = arith.mulf %cst_26, %48 : f32
      %50 = arith.addf %37, %49 : f32
      %cst_27 = arith.constant 0.000000e+00 : f32
      %51 = vector.broadcast %50 : f32 to vector<1x128xf32>
      %52 = vector.broadcast %cst_27 : f32 to vector<1x128xf32>
      %53 = arith.select %14, %51, %52 : vector<1x128xi1>, vector<1x128xf32>
      %c0_28 = arith.constant 0 : index
      %c0_29 = arith.constant 0 : index
      %54 = vector.load %arg6[%c0_28, %c0_29] : memref<1x128xf32, #tpu.memory_space<vmem>>, vector<1x128xf32>
      tpu.vector_store %arg6[%c0_28, %c0_29], %53 {strides = array<i32>} : memref<1x128xf32, #tpu.memory_space<vmem>>, vector<1x128xf32>,
    } else {
    }
    %c0_4 = arith.constant 0 : index
    %c0_5 = arith.constant 0 : index
    %10 = vector.load %arg6[%c0_4, %c0_5] : memref<1x128xf32, #tpu.memory_space<vmem>>, vector<1x128xf32>
    %11 = arith.addf %10, %5 : vector<1x128xf32>
    %c0_6 = arith.constant 0 : index
    %c0_7 = arith.constant 0 : index
    %12 = vector.load %arg6[%c0_6, %c0_7] : memref<1x128xf32, #tpu.memory_space<vmem>>, vector<1x128xf32>
    tpu.vector_store %arg6[%c0_6, %c0_7], %11 {strides = array<i32>} : memref<1x128xf32, #tpu.memory_space<vmem>>, vector<1x128xf32>,
    return
  }
  func.func @transform_0(%arg0: i32) -> i32 {
    %c0_i32 = arith.constant 0 : i32
    %c0_i32_0 = arith.constant 0 : i32
    return %c0_i32 : i32
  }
  func.func @transform_1(%arg0: i32) -> (i32, i32) {
    %c0_i32 = arith.constant 0 : i32
    %c0_i32_0 = arith.constant 0 : i32
    return %arg0, %c0_i32 : i32, i32
  }
  func.func @transform_2(%arg0: i32) -> (i32, i32) {
    %c0_i32 = arith.constant 0 : i32
    %c0_i32_0 = arith.constant 0 : i32
    return %arg0, %c0_i32 : i32, i32
  }
  func.func @transform_3(%arg0: i32) -> (i32, i32) {
    %c0_i32 = arith.constant 0 : i32
    %c0_i32_0 = arith.constant 0 : i32
    %c0_i32_1 = arith.constant 0 : i32
    return %c0_i32, %c0_i32_0 : i32, i32
  }
  func.func @transform_4(%arg0: i32) -> (i32, i32) {
    %c0_i32 = arith.constant 0 : i32
    %c0_i32_0 = arith.constant 0 : i32
    %c0_i32_1 = arith.constant 0 : i32
    return %c0_i32, %c0_i32_0 : i32, i32
  }
  func.func @transform_5(%arg0: i32) -> (i32, i32) {
    %c0_i32 = arith.constant 0 : i32
    %c0_i32_0 = arith.constant 0 : i32
    %c0_i32_1 = arith.constant 0 : i32
    return %c0_i32, %c0_i32_0 : i32, i32
  }
}

</mosaic_0001>

<bundles_post_ra>
// kernel: tpu_custom_call.1
= control target key start
LH: loop header
LB: loop body
LE: loop exit
PB: predicated region body
PF: predicated region fallthrough
CT: control target
= control target key end

     0   :  { %11 = vsyncpa [#allocation4], 0  ;;  %s323_s0 = inlined_call_operand.<no memory space> [shape: f32[1], index: 0, kind: input, shape index: {}]   ;;  %s324_s1 = inlined_call_operand.hbm [shape: f32[16,128], index: 1, kind: input, shape index: {}]   ;;  %s325_s2 = inlined_call_operand.hbm [shape: f32[16,128], index: 2, kind: input, shape index: {}]   ;;  %s326_s3 = inlined_call_operand.vmem [shape: f32[1,128], index: 3, kind: input, shape index: {}]   ;;  %s327_s4 = inlined_call_operand.hbm [shape: f32[24,32], index: 4, kind: input, shape index: {}]   ;;  %s328_s5 = inlined_call_operand.hbm [shape: f32[1,128], index: 5, kind: output, shape index: {}]  }
   0x1   :  { %12 = vsyncpa [#allocation7], 0 }
   0x2   :  { %13 = vsyncpa [#allocation5], 0  ;;  %s269_s18 = smov [#allocation6]   ;;  %s270_s20 = smov [#allocation3]  }
   0x3   :  { %s33_s19 = sshll.u32 %s269_s18, 4  ;;  %s21_s21 = sshll.u32 %s270_s20, 4  ;;  %s34_s19 = int_to_ptr.vmem [resolvable:$true] %s33_s19  ;;  %s22_s21 = int_to_ptr.vmem [resolvable:$true] %s21_s21 }
   0x4   :  { %s191_s22 = scalar_lea.vmem %s34_s19, 256  ;;  %p196_p1 = scmp.lt.s32.totalorder %s34_s19, %s34_s19 }
   0x5   :  { %p192_p0 = scmp.ne.s32.totalorder %s34_s19, %s191_s22  ;;  %p197_p2 = scmp.lt.s32.totalorder %s191_s22, %s191_s22 }
   0x7   :  { %p198_p3 = por %p197_p2, %p196_p1 }
   0x9   :  { %p199_p4 = pnand %p198_p3, %p192_p0 }
   0xb   :  { %202 = shalt.err (!%p199_p4)
}
   0xc   :  { %s271_s23 = smov 128   ;;  %s272_s24 = smov 8  }
   0xd   :  { %39 = dma.hbm_to_vmem [thread:$0]  %s325_s2, 256, %s34_s19, [#allocation7], %s271_s23, %s271_s23, %s272_s24  }
   0xe   :  { %s211_s27 = scalar_lea.vmem %s22_s21, 256  ;;  %p216_p6 = scmp.lt.s32.totalorder %s22_s21, %s22_s21 }
   0xf   :  { %p212_p5 = scmp.ne.s32.totalorder %s22_s21, %s211_s27  ;;  %p217_p7 = scmp.lt.s32.totalorder %s211_s27, %s211_s27 }
  0x11   :  { %p218_p8 = por %p217_p7, %p216_p6 }
  0x13   :  { %p219_p9 = pnand %p218_p8, %p212_p5 }
  0x15   :  { %222 = shalt.err (!%p219_p9)
}
  0x16   :  { %27 = dma.hbm_to_vmem [thread:$0]  %s324_s1, 256, %s22_s21, [#allocation4], %s271_s23, %s271_s23, %s272_s24  }
  0x17   :  { %s273_s30 = smov [#allocation8]  }
  0x18   :  { %s47_s6 = sshll.u32 %s273_s30, 4  ;;  %s48_s6 = int_to_ptr.vmem [resolvable:$true] %s47_s6 }
  0x19   :  { %s231_s7 = scalar_lea.vmem %s48_s6, 384  ;;  %p236_p11 = scmp.lt.s32.totalorder %s48_s6, %s48_s6 }
  0x1a   :  { %p232_p10 = scmp.ne.s32.totalorder %s48_s6, %s231_s7  ;;  %p237_p12 = scmp.lt.s32.totalorder %s231_s7, %s231_s7 }
  0x1c   :  { %p238_p13 = por %p237_p12, %p236_p11 }
  0x1e   :  { %p239_p0 = pnand %p238_p13, %p232_p10 }
  0x20   :  { %242 = shalt.err (!%p239_p0)
}
  0x21   :  { %53 = dma.hbm_to_vmem [thread:$0]  %s327_s4, 384, %s48_s6, [#allocation7], %s271_s23, %s271_s23, %s272_s24  }
  0x22   :  { %263 = dma.done.wait [#allocation4], 256  }
  0x23   :  { %264 = vsyncadd [#allocation4], 4294967040 }
  0x24   :  { %265 = dma.done.wait [#allocation7], 640  }
  0x25   :  { %266 = vsyncadd [#allocation7], 4294966656  ;;  %vm114_vm0 = vcmask 261120   ;;  %v111_v0 = vld [vmem:[#allocation8] sm:$0xff]  ;;  %v112_v1 = vld [vmem:[#allocation8 + $0x8] sm:$0xff]  ;;  %vm96_vm1 = vcmask 1040384   ;;  %v78_v56 = vlaneseq }
  0x26   :  { %v113_v2 = vld [vmem:[#allocation8 + $0x10] sm:$0xff]  ;;  %v115_v3 = vsel %vm114_vm0, %v111_v0, 0.0  ;;  %v85_v5 = vld [vmem:[%s326_s3] sm:$0x1]  ;;  %v118_v8 = vsel %vm114_vm0, %v112_v1, 0.0  ;;  %vm130_vm2 = vcmask 7168  }
  0x27   :  { %v121_v4 = vsel %vm114_vm0, %v113_v2, 0.0  ;;  %116 = vadd.xlane.f32.xlu0 %v115_v3  ;;  %v86_v6 = vmax.f32 %v85_v5, 1e-12  ;;  %v89_v7 = vsub.f32 1.0, %v85_v5  ;;  %v63_v46 = vld [vmem:[#allocation3] sm:$0xff]  ;;  %v64_v47 = vld [vmem:[#allocation3 + $0x8] sm:$0xff] }
  0x28   :  { %122 = vadd.xlane.f32.xlu1 %v121_v4  ;;  %v65_v48 = vld [vmem:[#allocation6] sm:$0xff]  ;;  %v66_v49 = vld [vmem:[#allocation6 + $0x8] sm:$0xff]  ;;  %s109_s12 = smul.f32 13.0, %s323_s0  ;;  %v79_v58 = vand.u32 127, %v78_v56  ;;  %s274_s17 = smov [#allocation9]  }
  0x29   :  { %179 = vlog2.f32 %v86_v6  ;;  %v90_v9 = vmax.f32 %v89_v7, 1e-12  ;;  %v67_v50 = vsub.f32 %v63_v46, %v65_v48  ;;  %v68_v51 = vsub.f32 %v64_v47, %v66_v49  ;;  %s159_s18 = sshll.u32 %s274_s17, 4  ;;  %s160_s18 = int_to_ptr.vmem [resolvable:$true] %s159_s18 }
  0x2a   :  { %vm84_vm3 = vcmp.eq.s32.totalorder %v79_v58, 0  ;;  %s243_s0 = scalar_lea.vmem %s160_s18, 16  ;;  %s247_s19 = scalar_lea.vmem %s160_s18, 32 }
  0x2b   :  { %119 = vadd.xlane.f32.xlu0 %v118_v8  ;;  %181 = vlog2.f32 %v90_v9  ;;  %v69_v52 = vmul.f32 %v67_v50, %v67_v50  ;;  %v70_v53 = vmul.f32 %v68_v51, %v68_v51  ;;  %p244_p1 = scmp.ne.s32.totalorder %s160_s18, %s243_s0  ;;  %p248_p2 = scmp.lt.s32.totalorder %s160_s18, %s160_s18 }
  0x2c   :  { %p249_p3 = scmp.lt.s32.totalorder %s247_s19, %s243_s0 }
  0x2d   :  { %v71_v54 = vadd.f32 %v70_v53, %v69_v52 }
  0x2e   :  { %p250_p4 = por %p249_p3, %p248_p2 }
  0x2f   :  { %v72_v55 = vrot.slane %v71_v54, 4 }
  0x30   :  { %p251_p5 = pnand %p250_p4, %p244_p1 }
  0x31   :  { %v73_v57 = vadd.f32 %v72_v55, %v71_v54 }
  0x33   :  { %v74_v59 = vrot.slane %v73_v57, 2 }
  0x35   :  { %v75_v60 = vadd.f32 %v74_v59, %v73_v57 }
  0x36   :  { %v180_v10 = vpop.eup %179 }
  0x37   :  { %v88_v11 = vmul.f32 0.6931472, %v180_v10  ;;  %v76_v63 = vrot.slane %v75_v60, 1 }
  0x38   :  { %v182_v12 = vpop.eup %181 }
  0x39   :  { %v92_v13 = vmul.f32 0.6931472, %v182_v12  ;;  %v93_v14 = vmul.f32 %v88_v11, %v85_v5  ;;  %v77_v0 = vadd.f32 %v76_v63, %v75_v60 }
  0x3b   :  { %v94_v15 = vmul.f32 %v92_v13, %v89_v7 }
  0x3d   :  { %v95_v16 = vadd.f32 %v94_v15, %v93_v14 }
  0x3f   :  { %v97_v17 = vsel %vm96_vm1, %v95_v16, 0.0 }
  0x40   :  { %98 = vadd.xlane.f32.xlu1 %v97_v17 }
  0xb0   :  { %v117_v18 = vpop.xlane.xlu0 %116 }
  0xb1   :  { %v123_v19 = vpop.xlane.xlu1 %122  ;;  %v124_v20 = vsub.f32 20.0, %v117_v18 }
  0xb2   :  { %v126_v21 = vsub.f32 20.0, %v123_v19 }
  0xb3   :  { %v127_v23 = vmax.f32 %v124_v20, 0.0 }
  0xb4   :  { %v120_v22 = vpop.xlane.xlu0 %119  ;;  %v129_v25 = vmax.f32 %v126_v21, 0.0 }
  0xb5   :  { %v125_v24 = vsub.f32 20.0, %v120_v22  ;;  %v131_v27 = vsel %vm130_vm2, %v127_v23, 0.0 }
  0xb6   :  { %v134_v29 = vsel %vm130_vm2, %v129_v25, 0.0 }
  0xb7   :  { %v128_v26 = vmax.f32 %v125_v24, 0.0 }
  0xb9   :  { %v132_v28 = vsel %vm130_vm2, %v128_v26, 0.0 }
  0xba   :  { %v133_v30 = vadd.f32 %v132_v28, %v131_v27 }
  0xbc   :  { %v135_v31 = vadd.f32 %v134_v29, %v133_v30 }
  0xbe   :  { %136 = vadd.xlane.f32.xlu0 %v135_v31 }
  0xc9   :  { %v99_v32 = vpop.xlane.xlu1 %98 }
  0xca   :  { %v100_v33 = vrot.slane %v99_v32, 4 }
  0xcc   :  { %v101_v34 = vadd.f32 %v100_v33, %v99_v32 }
  0xce   :  { %v102_v35 = vrot.slane %v101_v34, 2 }
  0xd0   :  { %v103_v36 = vadd.f32 %v102_v35, %v101_v34 }
  0xd2   :  { %v104_v37 = vrot.slane %v103_v36, 1 }
  0xd4   :  { %v105_v38 = vadd.f32 %v104_v37, %v103_v36 }
  0xd6   :  { %169 = vpush %v105_v38 }
 0x107   :  { %s170_s3 = spop %169 }
 0x108   :  { %s107_s4 = ssub.f32 0.0, %s170_s3 }
 0x10a   :  { %s110_s14 = sadd.f32 %s109_s12, %s107_s4 }
 0x147   :  { %v137_v39 = vpop.xlane.xlu0 %136 }
 0x148   :  { %v138_v40 = vrot.slane %v137_v39, 4 }
 0x14a   :  { %v139_v41 = vadd.f32 %v138_v40, %v137_v39 }
 0x14c   :  { %v140_v42 = vrot.slane %v139_v41, 2 }
 0x14e   :  { %v141_v43 = vadd.f32 %v140_v42, %v139_v41 }
 0x150   :  { %v142_v44 = vrot.slane %v141_v43, 1 }
 0x152   :  { %v143_v45 = vadd.f32 %v142_v44, %v141_v43 }
 0x154   :  { %171 = vpush %v143_v45 }
 0x185   :  { %s172_s13 = spop %171 }
 0x186   :  { %s145_s15 = smul.f32 0.1, %s172_s13 }
 0x188   :  { %s146_s16 = sadd.f32 %s145_s15, %s110_s14 }
 0x18a   :  { %v147_v61 = vstv %s146_s16 }
 0x18b   :  { %v148_v62 = vsel %vm84_vm3, %v147_v61, 0.0 }
 0x18c   :  { %149 = vst [vmem:[#allocation9] sm:$0x1] %v148_v62 }
 0x193   :  { %v150_v1 = vld [vmem:[#allocation9] sm:$0x1] }
 0x194   :  { %v151_v2 = vadd.f32 %v150_v1, %v77_v0 }
 0x196   :  { %152 = vst [vmem:[#allocation9] sm:$0x1] %v151_v2 }
 0x197   :  { %254 = shalt.err (!%p251_p5)
}
 0x198   :  { %162 = dma.vmem_to_hbm [thread:$0]  %s160_s18, 16, %s328_s5, [#allocation5]  }
 0x199   :  { %267 = dma.done.wait [#allocation5], 16  }
 0x19a   :  { %268 = vsyncadd [#allocation5], 4294967280 }
 0x19b   :  { %166 = vsyncpa [#allocation4], 1 }
 0x19c   :  { %167 = vsyncpa [#allocation7], 1 }
 0x19d   :  { %168 = vsyncpa [#allocation5], 1 }

</bundles_post_ra>
